<compile_context>
chip_gen: v6e
topology: v6e:2x2x1
jax: 0.10.0
libtpu: 0.0.40
codegen_flags: <defaults>
</compile_context>

<pallas_src>
import math

import jax
import jax.numpy as jnp
from jax import lax
from jax.experimental import pallas as pl
from jax.experimental.pallas import tpu as pltpu


# ---------------------------------------------------------------------------
# Kernels
# ---------------------------------------------------------------------------

def _linear_small_kernel(x_ref, w_ref, b_ref, o_ref):
    # x_ref: (tm, K), w_ref: (N, K) [PyTorch layout, contracted on K],
    # b_ref: (1, N), o_ref: (tm, N).  Single grid axis over M; the weight /
    # bias block indices are constant so they are DMA'd into VMEM once.
    acc = lax.dot_general(
        x_ref[...], w_ref[...],
        dimension_numbers=(((1,), (1,)), ((), ())),
        preferred_element_type=jnp.float32,
    )
    o_ref[...] = (acc + b_ref[...].astype(jnp.float32)).astype(o_ref.dtype)


def _linear_tiled_kernel(x_ref, w_ref, b_ref, o_ref, acc_ref):
    # x_ref: (tm, tk), w_ref: (tn, tk), b_ref: (1, tn), o_ref: (tm, tn)
    # acc_ref: (tm, tn) f32 accumulator resident across the K ("arbitrary") axis.
    k = pl.program_id(2)
    partial = lax.dot_general(
        x_ref[...], w_ref[...],
        dimension_numbers=(((1,), (1,)), ((), ())),
        preferred_element_type=jnp.float32,
    )

    @pl.when(k == 0)
    def _():
        acc_ref[...] = partial          # direct write: no zero-init + add

    @pl.when(k != 0)
    def _():
        acc_ref[...] += partial

    @pl.when(k == pl.num_programs(2) - 1)
    def _():
        o_ref[...] = (acc_ref[...] + b_ref[...].astype(jnp.float32)).astype(
            o_ref.dtype
        )


# ---------------------------------------------------------------------------
# Tile selection
# ---------------------------------------------------------------------------

def _pick_tile(dim, candidates, unit):
    """Choose a hardware-friendly tile for `dim`.

    Returns (tile, padded_dim).  Dims no larger than the biggest candidate use
    a single full-extent block (exempt from the (8,128) divisibility rule);
    larger dims get the candidate tile (each a multiple of `unit`) that
    minimizes zero-padding (ties -> bigger tile), and the dim is padded up to
    a multiple of that tile.
    """
    if dim <= candidates[0]:
        return dim, dim
    best_key, best_t, best_pad = None, None, None
    for t in candidates:
        if t < unit or t % unit:
            continue
        padded = -(-dim // t) * t
        key = (padded, -t)
        if best_key is None or key < best_key:
            best_key, best_t, best_pad = key, t, padded
    return best_t, best_pad


# ---------------------------------------------------------------------------
# Wrapper
# ---------------------------------------------------------------------------

_SMALL_WEIGHT_BYTES = 2 * 1024 * 1024
_VMEM_LIMIT_BYTES = 48 * 1024 * 1024   # safe on v5e/v6e (128 MiB) and v7x (64 MiB)


def hebbian_linear_forward(x, weight, bias, *, compute_dtype=None,
                           tm=512, tn=512, tk=1024):
    """Pallas TPU forward of HebbianLinear: x @ weight.T + bias.

    x      : (..., in_features)
    weight : (out_features, in_features)   (PyTorch layout, consumed as-is)
    bias   : (out_features,)
    compute_dtype : optional matmul-input dtype (e.g. jnp.bfloat16) for
                    MXU-native throughput; accumulation stays f32 and the
                    output keeps x.dtype.  Default (None) keeps f32 inputs.
    """
    *lead, K = x.shape
    N, K_w = weight.shape
    assert K == K_w, (K, K_w)
    M = math.prod(lead) if lead else 1
    out_dtype = x.dtype

    x2 = x.reshape(M, K)
    b2 = bias.reshape(1, N)
    if compute_dtype is not None:
        x2 = x2.astype(compute_dtype)
        weight = weight.astype(compute_dtype)

    itemsize = x2.dtype.itemsize
    cost = pl.CostEstimate(
        flops=2 * M * N * K,
        transcendentals=0,
        bytes_accessed=(M * K + N * K) * itemsize
        + M * N * jnp.dtype(out_dtype).itemsize,
    )

    # ---------------- Small-weight fast path ----------------
    # Weight resident in VMEM, single "parallel" grid axis over M, no
    # K-reduction axis, no accumulator scratch.
    if N * K * itemsize <= _SMALL_WEIGHT_BYTES and K <= 2048 and N <= 2048:
        tm_s, m_pad = _pick_tile(M, (512, 256, 128), 8)
        if m_pad != M:
            x2 = jnp.pad(x2, ((0, m_pad - M), (0, 0)))

        out = pl.pallas_call(
            _linear_small_kernel,
            out_shape=jax.ShapeDtypeStruct((m_pad, N), out_dtype),
            grid_spec=pltpu.PrefetchScalarGridSpec(
                num_scalar_prefetch=0,
                grid=(m_pad // tm_s,),
                in_specs=[
                    pl.BlockSpec((tm_s, K), lambda i: (i, 0)),
                    pl.BlockSpec((N, K), lambda i: (0, 0)),
                    pl.BlockSpec((1, N), lambda i: (0, 0)),
                ],
                out_specs=pl.BlockSpec((tm_s, N), lambda i: (i, 0)),
            ),
            compiler_params=pltpu.CompilerParams(
                dimension_semantics=("parallel",),
                vmem_limit_bytes=_VMEM_LIMIT_BYTES,
            ),
            cost_estimate=cost,
        )(x2, weight, b2)

        if m_pad != M:
            out = out[:M]
        return out.reshape(*lead, N)

    # ---------------- General tiled path ----------------
    tm, m_pad = _pick_tile(M, (tm, tm // 2, tm // 4), 8)      # sublane dim
    tn, n_pad = _pick_tile(N, (tn, tn // 2), 128)              # output lane dim, >=256
    tk, k_pad = _pick_tile(K, (tk, tk // 2, tk // 4), 128)     # contraction lane dim

    if (m_pad, k_pad) != (M, K):
        x2 = jnp.pad(x2, ((0, m_pad - M), (0, k_pad - K)))
    if (n_pad, k_pad) != (N, K):
        weight = jnp.pad(weight, ((0, n_pad - N), (0, k_pad - K)))
    if n_pad != N:
        b2 = jnp.pad(b2, ((0, 0), (0, n_pad - N)))

    grid = (m_pad // tm, n_pad // tn, k_pad // tk)

    out = pl.pallas_call(
        _linear_tiled_kernel,
        out_shape=jax.ShapeDtypeStruct((m_pad, n_pad), out_dtype),
        grid_spec=pltpu.PrefetchScalarGridSpec(
            num_scalar_prefetch=0,
            grid=grid,
            in_specs=[
                pl.BlockSpec((tm, tk), lambda i, j, k: (i, k)),
                pl.BlockSpec((tn, tk), lambda i, j, k: (j, k)),   # weight (N, K) as-is
                pl.BlockSpec((1, tn), lambda i, j, k: (0, j)),
            ],
            out_specs=pl.BlockSpec((tm, tn), lambda i, j, k: (i, j)),
            scratch_shapes=[pltpu.VMEM((tm, tn), jnp.float32)],
        ),
        compiler_params=pltpu.CompilerParams(
            dimension_semantics=("parallel", "parallel", "arbitrary"),
            vmem_limit_bytes=_VMEM_LIMIT_BYTES,
        ),
        cost_estimate=cost,
    )(x2, weight, b2)

    if (m_pad, n_pad) != (M, N):
        out = out[:M, :N]
    return out.reshape(*lead, N)


def _reference(x, weight, bias):
    """Pure-JAX port of F.linear(x, weight, bias) for correctness checking."""
    return jnp.einsum("...k,nk->...n", x, weight,
                      precision=jax.lax.Precision.HIGHEST) + bias


if __name__ == "__main__":
    key = jax.random.PRNGKey(0)
    k_x, k_w, k_b, k_x2, k_w2, k_b2 = jax.random.split(key, 6)

    # --- 1) Small shapes matching the demo module (small-weight fast path) ---
    batch, seq, in_features, out_features = 2, 8, 32, 64
    x = jax.random.normal(k_x, (batch, seq, in_features), dtype=jnp.float32)
    # Module init: weight ~ 0.02*randn, bias = zeros (use a non-trivial bias too,
    # since forward must be correct for arbitrary post-hebbian parameters).
    weight = 0.02 * jax.random.normal(k_w, (out_features, in_features), jnp.float32)
    bias = 0.1 * jax.random.normal(k_b, (out_features,), jnp.float32)

    out = jax.block_until_ready(hebbian_linear_forward(x, weight, bias))
    ref = _reference(x, weight, bias)
    assert out.shape == (batch, seq, out_features)
    assert jnp.allclose(out, ref, rtol=1e-5, atol=1e-5), float(
        jnp.max(jnp.abs(out - ref))
    )

    # --- 2) Larger, non-divisible shapes (general tiled + padded path) ---
    m_big, k_big, n_big = 600, 1100, 640
    x_big = jax.random.normal(k_x2, (m_big, k_big), dtype=jnp.float32)
    w_big = 0.02 * jax.random.normal(k_w2, (n_big, k_big), jnp.float32)
    b_big = 0.1 * jax.random.normal(k_b2, (n_big,), jnp.float32)

    out_big = jax.block_until_ready(hebbian_linear_forward(x_big, w_big, b_big))
    ref_big = _reference(x_big, w_big, b_big)
    assert out_big.shape == (m_big, n_big)
    assert jnp.allclose(out_big, ref_big, rtol=1e-4, atol=1e-4), float(
        jnp.max(jnp.abs(out_big - ref_big))
    )

    print("KERNEL_OK")
</pallas_src>

<mosaic_0001>
module attributes {stable_mosaic.version = 11 : i64} {
  func.func @_linear_small_kernel(%arg0: i32, %arg1: memref<16x32xf32, #tpu.memory_space<vmem>>, %arg2: memref<64x32xf32, #tpu.memory_space<vmem>>, %arg3: memref<1x64xf32, #tpu.memory_space<vmem>>, %arg4: memref<16x64xf32, #tpu.memory_space<vmem>>) attributes {dimension_semantics = [#tpu.dimension_semantics<parallel>], iteration_bounds = array<i64: 1>, scalar_prefetch = 0 : i64, scratch_operands = 0 : i64, tpu.core_type = #tpu.core_type<tc>, window_params = [{transform_indices = @transform_0, window_bounds = array<i64: 16, 32>}, {pipeline_mode = #tpu.pipeline_mode<synchronous>, transform_indices = @transform_1, window_bounds = array<i64: 64, 32>}, {pipeline_mode = #tpu.pipeline_mode<synchronous>, transform_indices = @transform_2, window_bounds = array<i64: 1, 64>}, {transform_indices = @transform_3, window_bounds = array<i64: 16, 64>}]} {
    %c0 = arith.constant 0 : index
    %c0_0 = arith.constant 0 : index
    %0 = vector.load %arg1[%c0, %c0_0] : memref<16x32xf32, #tpu.memory_space<vmem>>, vector<16x32xf32>
    %c0_1 = arith.constant 0 : index
    %c0_2 = arith.constant 0 : index
    %1 = vector.load %arg2[%c0_1, %c0_2] : memref<64x32xf32, #tpu.memory_space<vmem>>, vector<64x32xf32>
    %cst = arith.constant dense<0.000000e+00> : vector<16x64xf32>
    %2 = tpu.matmul %0, %1, %cst {dimension_numbers = #tpu.dot_dimension_numbers<[1], [1], [0], [0], [0, 0, 1, 0], [], []>} : vector<16x32xf32>, vector<64x32xf32>, vector<16x64xf32> -> vector<16x64xf32>
    %c0_3 = arith.constant 0 : index
    %c0_4 = arith.constant 0 : index
    %3 = vector.load %arg3[%c0_3, %c0_4] : memref<1x64xf32, #tpu.memory_space<vmem>>, vector<1x64xf32>
    %4 = vector.broadcast %3 : vector<1x64xf32> to vector<16x64xf32>
    %5 = arith.addf %2, %4 : vector<16x64xf32>
    %c0_5 = arith.constant 0 : index
    %c0_6 = arith.constant 0 : index
    %6 = vector.load %arg4[%c0_5, %c0_6] : memref<16x64xf32, #tpu.memory_space<vmem>>, vector<16x64xf32>
    tpu.vector_store %arg4[%c0_5, %c0_6], %5 {strides = array<i32>} : memref<16x64xf32, #tpu.memory_space<vmem>>, vector<16x64xf32>,
    return
  }
  func.func @transform_0(%arg0: i32) -> (i32, i32) {
    %c0_i32 = arith.constant 0 : i32
    %c0_i32_0 = arith.constant 0 : i32
    return %arg0, %c0_i32 : i32, i32
  }
  func.func @transform_1(%arg0: i32) -> (i32, i32) {
    %c0_i32 = arith.constant 0 : i32
    %c0_i32_0 = arith.constant 0 : i32
    %c0_i32_1 = arith.constant 0 : i32
    return %c0_i32, %c0_i32_0 : i32, i32
  }
  func.func @transform_2(%arg0: i32) -> (i32, i32) {
    %c0_i32 = arith.constant 0 : i32
    %c0_i32_0 = arith.constant 0 : i32
    %c0_i32_1 = arith.constant 0 : i32
    return %c0_i32, %c0_i32_0 : i32, i32
  }
  func.func @transform_3(%arg0: i32) -> (i32, i32) {
    %c0_i32 = arith.constant 0 : i32
    %c0_i32_0 = arith.constant 0 : i32
    return %arg0, %c0_i32 : i32, i32
  }
}

</mosaic_0001>

<bundles_post_ra>
// kernel: tpu_custom_call.1
= control target key start
LH: loop header
LB: loop body
LE: loop exit
PB: predicated region body
PF: predicated region fallthrough
CT: control target
= control target key end

     0   :  { %vm32_vm0 = vcmask 261120   ;;  %s299_s0 = inlined_call_operand.vmem [shape: f32[16,32], index: 0, kind: input, shape index: {}]   ;;  %s300_s1 = inlined_call_operand.vmem [shape: f32[64,32], index: 1, kind: input, shape index: {}]   ;;  %s301_s2 = inlined_call_operand.vmem [shape: f32[1,64], index: 2, kind: input, shape index: {}]   ;;  %s302_s3 = inlined_call_operand.hbm [shape: f32[16,64], index: 3, kind: output, shape index: {}]  }
   0x1   :  { %v24_v0 = vld [vmem:[%s300_s1 + $0x38] sm:$0xff]  ;;  %v23_v1 = vld [vmem:[%s300_s1 + $0x30] sm:$0xff]  ;;  %v15_v2 = vld [vmem:[%s299_s0] sm:$0xff] }
   0x2   :  { %178 = vmatprep.subr.msk.mxu0 %vm32_vm0, %v24_v0  ;;  %194 = vmatprep.mubr.msk.f32.mxu0 %vm32_vm0, %v15_v2 }
   0x3   :  { %179 = vmatpush3.xpose.msk.msra.mxu0 %vm32_vm0, %v24_v0 }
   0x4   :  { %180 = vmatprep.subr.msk.mxu0 %vm32_vm0, %v23_v1 }
   0x5   :  { %8 = vsyncpa [#allocation3], 0  ;;  %v22_v3 = vld [vmem:[%s300_s1 + $0x28] sm:$0xff]  ;;  %v21_v4 = vld [vmem:[%s300_s1 + $0x20] sm:$0xff]  ;;  %s222_s7 = smov [#allocation2]   ;;  %vm138_vm1 = vcmask 523264  }
   0x6   :  { %v20_v5 = vld [vmem:[%s300_s1 + $0x18] sm:$0xff]  ;;  %v19_v6 = vld [vmem:[%s300_s1 + $0x10] sm:$0xff]  ;;  %v18_v7 = vld [vmem:[%s300_s1 + $0x8] sm:$0xff]  ;;  %s146_s8 = sshll.u32 %s222_s7, 4  ;;  %s147_s8 = int_to_ptr.vmem [resolvable:$true] %s146_s8 }
   0x7   :  { %181 = vmatpush3.xpose.msk.msra.mxu0 %vm32_vm0, %v23_v1  ;;  %v17_v8 = vld [vmem:[%s300_s1] sm:$0xff]  ;;  %v16_v9 = vld [vmem:[%s299_s0 + $0x8] sm:$0xff]  ;;  %s200_s1 = scalar_lea.vmem %s147_s8, 256  ;;  %p205_p1 = scmp.lt.s32.totalorder %s147_s8, %s147_s8 }
   0x8   :  { %182 = vmatprep.subr.msk.mxu0 %vm32_vm0, %v22_v3  ;;  %v157_v10 = vld [vmem:[%s301_s2] ss:$0 sm:$0xff]  ;;  %p201_p0 = scmp.ne.s32.totalorder %s147_s8, %s200_s1  ;;  %p206_p2 = scmp.lt.s32.totalorder %s200_s1, %s200_s1 }
   0xa   :  { %p207_p3 = por %p206_p2, %p205_p1 }
   0xb   :  { %183 = vmatpush3.xpose.msk.msra.mxu0 %vm32_vm0, %v22_v3 }
   0xc   :  { %184 = vmatprep.subr.msk.mxu0 %vm32_vm0, %v21_v4  ;;  %p208_p4 = pnand %p207_p3, %p201_p0 }
   0xf   :  { %185 = vmatpush3.xpose.msk.msra.mxu0 %vm32_vm0, %v21_v4 }
  0x10   :  { %186 = vmatprep.subr.msk.mxu0 %vm32_vm0, %v20_v5 }
  0x13   :  { %187 = vmatpush3.xpose.msk.msra.mxu0 %vm32_vm0, %v20_v5 }
  0x14   :  { %188 = vmatprep.subr.msk.mxu0 %vm32_vm0, %v19_v6 }
  0x17   :  { %189 = vmatpush3.xpose.msk.msra.mxu0 %vm32_vm0, %v19_v6 }
  0x18   :  { %190 = vmatprep.subr.msk.mxu0 %vm32_vm0, %v18_v7 }
  0x1b   :  { %191 = vmatpush3.xpose.msk.msra.mxu0 %vm32_vm0, %v18_v7 }
  0x1c   :  { %192 = vmatprep.subr.msk.mxu0 %vm32_vm0, %v17_v8 }
  0x1f   :  { %193 = vmatpush3.xpose.msk.msra.mxu0 %vm32_vm0, %v17_v8 }
  0x22   :  { %195 = vmatmul.mubr.msk.f32.vlgmr.msra.gmra.mxu0 %vm32_vm0, %v16_v9 }
  0xe2   :  { %v196_v11 = vpop.f32.mrf.mxu0 }
  0xe3   :  { %v135_v12 = vadd.f32 %v196_v11, %v157_v10 }
  0xe4   :  { %v129_v13 = vpop.f32.mrf.mxu0 }
  0xe5   :  { %140 = vst.msk [vmem:[#allocation2 + $0x8] sm:$0xff] %vm138_vm1, %v135_v12  ;;  %v130_v14 = vadd.f32 %v157_v10, %v129_v13 }
  0xe7   :  { %139 = vst.msk [vmem:[#allocation2] sm:$0xff] %vm138_vm1, %v130_v14 }
  0xe8   :  { %211 = shalt.err (!%p208_p4)
}
  0xe9   :  { %s223_s0 = smov 128   ;;  %s224_s9 = smov 8  }
  0xea   :  { %152 = dma.vmem_to_hbm [thread:$0]  %s147_s8, 256, %s302_s3, [#allocation3], %s223_s0, %s223_s0, %s224_s9  }
  0xeb   :  { %220 = dma.done.wait [#allocation3], 256  }
  0xec   :  { %221 = vsyncadd [#allocation3], 4294967040 }
  0xed   :  { %156 = vsyncpa [#allocation3], 1 }

</bundles_post_ra>
